<compile_context>
chip_gen: v6e
topology: v6e:2x2x1
jax: 0.10.0
libtpu: 0.0.40
codegen_flags: <defaults>
</compile_context>

<pallas_src>
import functools

import jax
import jax.numpy as jnp
from jax import lax
from jax.experimental import pallas as pl
from jax.experimental.pallas import tpu as pltpu

LN_EPS = 1e-12
MASK_NEG = 1e30


# ----------------------------- kernel ----------------------------------------

def end_logits_kernel(h_ref, ss_ref, pm_ref, w0h_ref, w0s_ref, b0_ref,
                      gw_ref, sgw_ref, off_ref, o_ref):
    # h_ref  : (1, tS, H)  hidden-states tile
    # ss_ref : (1, SS, H)  start states (SS == tS, or 1 -> broadcast over seq)
    # pm_ref : (1, 1, tS)  p_mask tile (1.0 == masked)
    # w0h_ref, w0s_ref : (H, H)   dense_0 weight halves, (in, out) layout
    # b0_ref : (1, H)      dense_0 bias
    # gw_ref : (1, H)      ln_gamma * w1
    # sgw_ref, off_ref : (1, 1)   sum(ln_gamma*w1), (ln_beta . w1) + b1
    # o_ref  : (1, 1, tS)  masked end logits (lane-dense on S)
    h = h_ref[0]                                              # (tS, H)
    ss = ss_ref[0]                                            # (SS, H)

    a = jnp.dot(h, w0h_ref[...], preferred_element_type=jnp.float32)   # (tS, H)
    c = jnp.dot(ss, w0s_ref[...], preferred_element_type=jnp.float32)  # (SS, H)
    x = jnp.tanh(a + c + b0_ref[...])[None]                   # (1, tS, H)

    # LayerNorm stats + folded (gamma,beta,w1,b1) final reduction.
    mu = jnp.mean(x, axis=-1)                                 # (1, tS)
    msq = jnp.mean(x * x, axis=-1)                            # (1, tS)
    t = jnp.sum(x * gw_ref[...], axis=-1)                     # (1, tS)
    var = jnp.maximum(msq - mu * mu, 0.0)
    logits = lax.rsqrt(var + LN_EPS) * (t - mu * sgw_ref[...]) + off_ref[...]

    o_ref[...] = jnp.where(pm_ref[...] != 0.0, -MASK_NEG, logits[None])


# ----------------------------- wrapper ----------------------------------------

def pooler_end_logits(hidden_states, params, start_states=None,
                      start_positions=None, p_mask=None, seq_tile=None):
    """Forward of PoolerEndLogits. Returns (B, S) end logits."""
    assert start_states is not None or start_positions is not None, \
        "One of start_states, start_positions should be not None"
    B, S, H = hidden_states.shape
    f32 = jnp.float32
    hidden_states = hidden_states.astype(f32)

    if start_positions is not None:
        # torch: gather the start token's hidden state, then expand over seq.
        # The expand is done by broadcasting inside the kernel (SS block = 1).
        idx = start_positions.reshape(B, 1, 1).astype(jnp.int32)
        ss = jnp.take_along_axis(hidden_states, idx, axis=1)   # (B, 1, H)
        ss_seq = 1
    else:
        ss = start_states.astype(f32)                          # (B, S, H)
        ss_seq = S

    if p_mask is None:
        p_mask = jnp.zeros((B, S), f32)
    pm = p_mask.reshape(B, 1, S).astype(f32)

    # Fold LayerNorm affine + dense_1 into the final lane reduction.
    w1 = params["w1"].astype(f32)                              # (H,)
    gw = (params["ln_gamma"].astype(f32) * w1).reshape(1, H)
    sgw = jnp.sum(gw).reshape(1, 1)
    off = (jnp.sum(params["ln_beta"].astype(f32) * w1)
           + params["b1"].astype(f32)).reshape(1, 1)
    w0h = params["w0_h"].astype(f32)                           # (H, H)
    w0s = params["w0_s"].astype(f32)                           # (H, H)
    b0 = params["b0"].reshape(1, H).astype(f32)

    if seq_tile is None:
        seq_tile = next((t for t in (512, 256, 128) if S % t == 0), S)
    tS = seq_tile
    assert S % tS == 0
    n_s = S // tS

    ss_blk_seq = 1 if ss_seq == 1 else tS
    if ss_seq == 1:
        ss_index = lambda b, s: (b, 0, 0)
    else:
        ss_index = lambda b, s: (b, s, 0)

    out = pl.pallas_call(
        end_logits_kernel,
        out_shape=jax.ShapeDtypeStruct((B, 1, S), f32),
        grid=(B, n_s),
        in_specs=[
            pl.BlockSpec((1, tS, H), lambda b, s: (b, s, 0)),          # hidden
            pl.BlockSpec((1, ss_blk_seq, H), ss_index),                # start states
            pl.BlockSpec((1, 1, tS), lambda b, s: (b, 0, s)),          # p_mask
            pl.BlockSpec((H, H), lambda b, s: (0, 0)),                 # w0_h
            pl.BlockSpec((H, H), lambda b, s: (0, 0)),                 # w0_s
            pl.BlockSpec((1, H), lambda b, s: (0, 0)),                 # b0
            pl.BlockSpec((1, H), lambda b, s: (0, 0)),                 # gamma*w1
            pl.BlockSpec((1, 1), lambda b, s: (0, 0)),                 # sum(gamma*w1)
            pl.BlockSpec((1, 1), lambda b, s: (0, 0)),                 # beta.w1 + b1
        ],
        out_specs=pl.BlockSpec((1, 1, tS), lambda b, s: (b, 0, s)),
        compiler_params=pltpu.CompilerParams(
            dimension_semantics=("parallel", "parallel")),
    )(hidden_states, ss, pm, w0h, w0s, b0, gw, sgw, off)

    return out.reshape(B, S)


# ----------------------------- reference (pure JAX) ----------------------------

def reference_end_logits(hidden, start_states, p_mask, params):
    # start_states: (B, S, H) or (B, 1, H) (broadcast over seq)
    x = (jnp.einsum("bsh,hg->bsg", hidden, params["w0_h"])
         + jnp.einsum("bsh,hg->bsg", start_states, params["w0_s"])
         + params["b0"])
    x = jnp.tanh(x)
    mu = x.mean(-1, keepdims=True)
    var = ((x - mu) ** 2).mean(-1, keepdims=True)
    xn = (x - mu) * lax.rsqrt(var + LN_EPS)
    xn = xn * params["ln_gamma"] + params["ln_beta"]
    logits = jnp.einsum("bsh,h->bs", xn, params["w1"]) + params["b1"]
    # torch float32 masking formula (identical to the in-kernel where() for 0/1 masks)
    return logits * (1.0 - p_mask) - MASK_NEG * p_mask


# ----------------------------- main --------------------------------------------

if __name__ == "__main__":
    B, S, H = 2, 8, 32

    key = jax.random.PRNGKey(0)
    ks = jax.random.split(key, 10)
    nrm = jax.random.normal
    scale = 0.05

    params = {
        # dense_0 (2H -> H) stored pre-transposed and split into halves
        "w0_h": scale * nrm(ks[0], (H, H), jnp.float32),
        "w0_s": scale * nrm(ks[1], (H, H), jnp.float32),
        "b0":   scale * nrm(ks[2], (H,), jnp.float32),
        # LayerNorm(H)
        "ln_gamma": 1.0 + 0.1 * nrm(ks[3], (H,), jnp.float32),
        "ln_beta":  0.1 * nrm(ks[4], (H,), jnp.float32),
        # dense_1 (H -> 1)
        "w1": scale * nrm(ks[5], (H,), jnp.float32),
        "b1": scale * nrm(ks[6], (), jnp.float32),
    }

    hidden = nrm(ks[7], (B, S, H), jnp.float32)
    start_states = nrm(ks[8], (B, S, H), jnp.float32)
    p_mask = jnp.zeros((B, S), jnp.float32).at[:, 0].set(1.0)   # mask first token
    start_positions = jnp.array([3, 5], jnp.int32)

    # --- path 1: explicit start_states -------------------------------------
    out1 = pooler_end_logits(hidden, params, start_states=start_states,
                             p_mask=p_mask)
    out1 = jax.block_until_ready(out1)
    ref1 = reference_end_logits(hidden, start_states, p_mask, params)
    assert out1.shape == (B, S)
    err1 = float(jnp.max(jnp.abs(out1 - ref1)))
    assert err1 < 1e-3, f"start_states path mismatch: {err1}"

    # --- path 2: start_positions (gather + broadcast over seq) --------------
    out2 = pooler_end_logits(hidden, params, start_positions=start_positions,
                             p_mask=p_mask)
    out2 = jax.block_until_ready(out2)
    ss2 = jnp.take_along_axis(hidden, start_positions[:, None, None], axis=1)
    ref2 = reference_end_logits(hidden, ss2, p_mask, params)
    err2 = float(jnp.max(jnp.abs(out2 - ref2)))
    assert err2 < 1e-3, f"start_positions path mismatch: {err2}"

    print("KERNEL_OK")
</pallas_src>

<mosaic_0001>
module attributes {stable_mosaic.version = 11 : i64} {
  func.func @end_logits_kernel(%arg0: i32, %arg1: i32, %arg2: memref<1x8x32xf32, #tpu.memory_space<vmem>>, %arg3: memref<1x8x32xf32, #tpu.memory_space<vmem>>, %arg4: memref<1x1x8xf32, #tpu.memory_space<vmem>>, %arg5: memref<32x32xf32, #tpu.memory_space<vmem>>, %arg6: memref<32x32xf32, #tpu.memory_space<vmem>>, %arg7: memref<1x32xf32, #tpu.memory_space<vmem>>, %arg8: memref<1x32xf32, #tpu.memory_space<vmem>>, %arg9: memref<1x1xf32, #tpu.memory_space<vmem>>, %arg10: memref<1x1xf32, #tpu.memory_space<vmem>>, %arg11: memref<1x1x8xf32, #tpu.memory_space<vmem>>) attributes {dimension_semantics = [#tpu.dimension_semantics<parallel>, #tpu.dimension_semantics<parallel>], iteration_bounds = array<i64: 2, 1>, scalar_prefetch = 0 : i64, scratch_operands = 0 : i64, tpu.core_type = #tpu.core_type<tc>, window_params = [{transform_indices = @transform_0, window_bounds = array<i64: 1, 8, 32>}, {transform_indices = @transform_1, window_bounds = array<i64: 1, 8, 32>}, {transform_indices = @transform_2, window_bounds = array<i64: 1, 1, 8>}, {pipeline_mode = #tpu.pipeline_mode<synchronous>, transform_indices = @transform_3, window_bounds = array<i64: 32, 32>}, {pipeline_mode = #tpu.pipeline_mode<synchronous>, transform_indices = @transform_4, window_bounds = array<i64: 32, 32>}, {pipeline_mode = #tpu.pipeline_mode<synchronous>, transform_indices = @transform_5, window_bounds = array<i64: 1, 32>}, {pipeline_mode = #tpu.pipeline_mode<synchronous>, transform_indices = @transform_6, window_bounds = array<i64: 1, 32>}, {pipeline_mode = #tpu.pipeline_mode<synchronous>, transform_indices = @transform_7, window_bounds = array<i64: 1, 1>}, {pipeline_mode = #tpu.pipeline_mode<synchronous>, transform_indices = @transform_8, window_bounds = array<i64: 1, 1>}, {transform_indices = @transform_9, window_bounds = array<i64: 1, 1, 8>}]} {
    %c0 = arith.constant 0 : index
    %c0_0 = arith.constant 0 : index
    %c0_1 = arith.constant 0 : index
    %0 = vector.load %arg2[%c0, %c0_0, %c0_1] : memref<1x8x32xf32, #tpu.memory_space<vmem>>, vector<1x8x32xf32>
    %1 = vector.shape_cast %0 : vector<1x8x32xf32> to vector<8x32xf32>
    %c0_2 = arith.constant 0 : index
    %c0_3 = arith.constant 0 : index
    %c0_4 = arith.constant 0 : index
    %2 = vector.load %arg3[%c0_2, %c0_3, %c0_4] : memref<1x8x32xf32, #tpu.memory_space<vmem>>, vector<1x8x32xf32>
    %3 = vector.shape_cast %2 : vector<1x8x32xf32> to vector<8x32xf32>
    %c0_5 = arith.constant 0 : index
    %c0_6 = arith.constant 0 : index
    %4 = vector.load %arg5[%c0_5, %c0_6] : memref<32x32xf32, #tpu.memory_space<vmem>>, vector<32x32xf32>
    %cst = arith.constant dense<0.000000e+00> : vector<8x32xf32>
    %5 = tpu.matmul %1, %4, %cst {dimension_numbers = #tpu.dot_dimension_numbers<[1], [0], [0], [1], [0, 0, 1, 1], [], []>} : vector<8x32xf32>, vector<32x32xf32>, vector<8x32xf32> -> vector<8x32xf32>
    %c0_7 = arith.constant 0 : index
    %c0_8 = arith.constant 0 : index
    %6 = vector.load %arg6[%c0_7, %c0_8] : memref<32x32xf32, #tpu.memory_space<vmem>>, vector<32x32xf32>
    %cst_9 = arith.constant dense<0.000000e+00> : vector<8x32xf32>
    %7 = tpu.matmul %3, %6, %cst_9 {dimension_numbers = #tpu.dot_dimension_numbers<[1], [0], [0], [1], [0, 0, 1, 1], [], []>} : vector<8x32xf32>, vector<32x32xf32>, vector<8x32xf32> -> vector<8x32xf32>
    %8 = arith.addf %5, %7 : vector<8x32xf32>
    %c0_10 = arith.constant 0 : index
    %c0_11 = arith.constant 0 : index
    %9 = vector.load %arg7[%c0_10, %c0_11] : memref<1x32xf32, #tpu.memory_space<vmem>>, vector<1x32xf32>
    %10 = vector.broadcast %9 : vector<1x32xf32> to vector<8x32xf32>
    %11 = arith.addf %8, %10 : vector<8x32xf32>
    %12 = math.tanh %11 : vector<8x32xf32>
    %13 = vector.shape_cast %12 : vector<8x32xf32> to vector<1x8x32xf32>
    %cst_12 = arith.constant dense<0.000000e+00> : vector<1x8xf32>
    %14 = vector.multi_reduction <add>, %13, %cst_12 [2] : vector<1x8x32xf32> to vector<1x8xf32>
    %cst_13 = arith.constant 3.200000e+01 : f32
    %15 = vector.broadcast %cst_13 : f32 to vector<1x8xf32>
    %16 = arith.divf %14, %15 : vector<1x8xf32>
    %17 = arith.mulf %13, %13 : vector<1x8x32xf32>
    %cst_14 = arith.constant dense<0.000000e+00> : vector<1x8xf32>
    %18 = vector.multi_reduction <add>, %17, %cst_14 [2] : vector<1x8x32xf32> to vector<1x8xf32>
    %cst_15 = arith.constant 3.200000e+01 : f32
    %19 = vector.broadcast %cst_15 : f32 to vector<1x8xf32>
    %20 = arith.divf %18, %19 : vector<1x8xf32>
    %c0_16 = arith.constant 0 : index
    %c0_17 = arith.constant 0 : index
    %21 = vector.load %arg8[%c0_16, %c0_17] : memref<1x32xf32, #tpu.memory_space<vmem>>, vector<1x32xf32>
    %22 = vector.shape_cast %21 : vector<1x32xf32> to vector<1x1x32xf32>
    %23 = vector.broadcast %22 : vector<1x1x32xf32> to vector<1x8x32xf32>
    %24 = arith.mulf %13, %23 : vector<1x8x32xf32>
    %cst_18 = arith.constant dense<0.000000e+00> : vector<1x8xf32>
    %25 = vector.multi_reduction <add>, %24, %cst_18 [2] : vector<1x8x32xf32> to vector<1x8xf32>
    %26 = arith.mulf %16, %16 : vector<1x8xf32>
    %27 = arith.subf %20, %26 : vector<1x8xf32>
    %cst_19 = arith.constant 0.000000e+00 : f32
    %28 = vector.broadcast %cst_19 : f32 to vector<1x8xf32>
    %29 = arith.maximumf %27, %28 : vector<1x8xf32>
    %cst_20 = arith.constant 9.99999996E-13 : f32
    %30 = vector.broadcast %cst_20 : f32 to vector<1x8xf32>
    %31 = arith.addf %29, %30 : vector<1x8xf32>
    %32 = math.rsqrt %31 : vector<1x8xf32>
    %c0_21 = arith.constant 0 : index
    %c0_22 = arith.constant 0 : index
    %33 = vector.load %arg9[%c0_21, %c0_22] : memref<1x1xf32, #tpu.memory_space<vmem>>, vector<1x1xf32>
    %34 = vector.broadcast %33 : vector<1x1xf32> to vector<1x8xf32>
    %35 = arith.mulf %16, %34 : vector<1x8xf32>
    %36 = arith.subf %25, %35 : vector<1x8xf32>
    %37 = arith.mulf %32, %36 : vector<1x8xf32>
    %c0_23 = arith.constant 0 : index
    %c0_24 = arith.constant 0 : index
    %38 = vector.load %arg10[%c0_23, %c0_24] : memref<1x1xf32, #tpu.memory_space<vmem>>, vector<1x1xf32>
    %39 = vector.broadcast %38 : vector<1x1xf32> to vector<1x8xf32>
    %40 = arith.addf %37, %39 : vector<1x8xf32>
    %c0_25 = arith.constant 0 : index
    %c0_26 = arith.constant 0 : index
    %c0_27 = arith.constant 0 : index
    %41 = vector.load %arg4[%c0_25, %c0_26, %c0_27] : memref<1x1x8xf32, #tpu.memory_space<vmem>>, vector<1x1x8xf32>
    %cst_28 = arith.constant 0.000000e+00 : f32
    %42 = vector.broadcast %cst_28 : f32 to vector<1x1x8xf32>
    %43 = arith.cmpf one, %41, %42 : vector<1x1x8xf32>
    %44 = vector.shape_cast %40 : vector<1x8xf32> to vector<1x1x8xf32>
    %cst_29 = arith.constant -1.000000e+30 : f32
    %45 = vector.broadcast %cst_29 : f32 to vector<1x1x8xf32>
    %46 = arith.select %43, %45, %44 : vector<1x1x8xi1>, vector<1x1x8xf32>
    %c0_30 = arith.constant 0 : index
    %c0_31 = arith.constant 0 : index
    %c0_32 = arith.constant 0 : index
    %47 = vector.load %arg11[%c0_30, %c0_31, %c0_32] : memref<1x1x8xf32, #tpu.memory_space<vmem>>, vector<1x1x8xf32>
    tpu.vector_store %arg11[%c0_30, %c0_31, %c0_32], %46 {strides = array<i32>} : memref<1x1x8xf32, #tpu.memory_space<vmem>>, vector<1x1x8xf32>,
    return
  }
  func.func @transform_0(%arg0: i32, %arg1: i32) -> (i32, i32, i32) {
    %c0_i32 = arith.constant 0 : i32
    %c0_i32_0 = arith.constant 0 : i32
    return %arg0, %arg1, %c0_i32 : i32, i32, i32
  }
  func.func @transform_1(%arg0: i32, %arg1: i32) -> (i32, i32, i32) {
    %c0_i32 = arith.constant 0 : i32
    %c0_i32_0 = arith.constant 0 : i32
    return %arg0, %arg1, %c0_i32 : i32, i32, i32
  }
  func.func @transform_2(%arg0: i32, %arg1: i32) -> (i32, i32, i32) {
    %c0_i32 = arith.constant 0 : i32
    %c0_i32_0 = arith.constant 0 : i32
    return %arg0, %c0_i32, %arg1 : i32, i32, i32
  }
  func.func @transform_3(%arg0: i32, %arg1: i32) -> (i32, i32) {
    %c0_i32 = arith.constant 0 : i32
    %c0_i32_0 = arith.constant 0 : i32
    %c0_i32_1 = arith.constant 0 : i32
    return %c0_i32, %c0_i32_0 : i32, i32
  }
  func.func @transform_4(%arg0: i32, %arg1: i32) -> (i32, i32) {
    %c0_i32 = arith.constant 0 : i32
    %c0_i32_0 = arith.constant 0 : i32
    %c0_i32_1 = arith.constant 0 : i32
    return %c0_i32, %c0_i32_0 : i32, i32
  }
  func.func @transform_5(%arg0: i32, %arg1: i32) -> (i32, i32) {
    %c0_i32 = arith.constant 0 : i32
    %c0_i32_0 = arith.constant 0 : i32
    %c0_i32_1 = arith.constant 0 : i32
    return %c0_i32, %c0_i32_0 : i32, i32
  }
  func.func @transform_6(%arg0: i32, %arg1: i32) -> (i32, i32) {
    %c0_i32 = arith.constant 0 : i32
    %c0_i32_0 = arith.constant 0 : i32
    %c0_i32_1 = arith.constant 0 : i32
    return %c0_i32, %c0_i32_0 : i32, i32
  }
  func.func @transform_7(%arg0: i32, %arg1: i32) -> (i32, i32) {
    %c0_i32 = arith.constant 0 : i32
    %c0_i32_0 = arith.constant 0 : i32
    %c0_i32_1 = arith.constant 0 : i32
    return %c0_i32, %c0_i32_0 : i32, i32
  }
  func.func @transform_8(%arg0: i32, %arg1: i32) -> (i32, i32) {
    %c0_i32 = arith.constant 0 : i32
    %c0_i32_0 = arith.constant 0 : i32
    %c0_i32_1 = arith.constant 0 : i32
    return %c0_i32, %c0_i32_0 : i32, i32
  }
  func.func @transform_9(%arg0: i32, %arg1: i32) -> (i32, i32, i32) {
    %c0_i32 = arith.constant 0 : i32
    %c0_i32_0 = arith.constant 0 : i32
    return %arg0, %c0_i32, %arg1 : i32, i32, i32
  }
}

</mosaic_0001>

<bundles_post_ra>
// kernel: tpu_custom_call.1
= control target key start
LH: loop header
LB: loop body
LE: loop exit
PB: predicated region body
PF: predicated region fallthrough
CT: control target
= control target key end

     0   :  { %s1580_s0 = inlined_call_operand.hbm [shape: f32[2,8,32], index: 0, kind: input, shape index: {}]   ;;  %s1581_s1 = inlined_call_operand.hbm [shape: f32[2,8,32], index: 1, kind: input, shape index: {}]   ;;  %s1582_s2 = inlined_call_operand.vmem [shape: f32[2,1,8], index: 2, kind: input, shape index: {}]   ;;  %s1583_s3 = inlined_call_operand.hbm [shape: f32[32,32], index: 3, kind: input, shape index: {}]   ;;  %s1584_s4 = inlined_call_operand.hbm [shape: f32[32,32], index: 4, kind: input, shape index: {}]   ;;  %s1585_s5 = inlined_call_operand.vmem [shape: f32[1,32], index: 5, kind: input, shape index: {}]   ;;  %s1586_s6 = inlined_call_operand.vmem [shape: f32[1,32], index: 6, kind: input, shape index: {}]   ;;  %s1587_s7 = inlined_call_operand.<no memory space> [shape: f32[1,1], index: 7, kind: input, shape index: {}]   ;;  %s1588_s9 = inlined_call_operand.hbm [shape: f32[2,1,8], index: 9, kind: output, shape index: {}]   ;;  %s1589_s8 = inlined_call_operand.<no memory space> [shape: f32[1,1], index: 8, kind: input, shape index: {}]  }
   0x1   :  { %1592 = sst [smem:[#allocation19_spill]] %s1580_s0  ;;  %v14_v0 = vstv %s1587_s7  ;;  %v16_v1 = vstv %s1589_s8 }
   0x2   :  { %1593 = sst [smem:[#allocation20_spill]] %s1581_s1  ;;  %15 = vst [vmem:[#allocation2] sm:$0x1] %v14_v0  ;;  %17 = vst [vmem:[#allocation3] sm:$0x1] %v16_v1 }
   0x3   :  { %1594 = sst [smem:[#allocation21_spill]] %s1583_s3 }
   0x4   :  { %1595 = sst [smem:[#allocation22_spill]] %s1584_s4 }
   0x5   :  { %18 = vsyncpa [#allocation5], 0 }
   0x6   :  { %20 = vsyncpa [#allocation5 + $0x1], 0 }
   0x7   :  { %21 = vsyncpa [#allocation8], 0 }
   0x8   :  { %23 = vsyncpa [#allocation8 + $0x1], 0 }
   0x9   :  { %24 = vsyncpa [#allocation11], 0 }
   0xa   :  { %25 = vsyncpa [#allocation6], 0 }
   0xb   :  { %27 = vsyncpa [#allocation6 + $0x1], 0  ;;  %s1357_s13 = smov 0   ;;  %s1359_s14 = smov 0  }
   0xc   :  { %s1361_s15 = smov 0   ;;  %s1363_s7 = smov 0  }
   0xd   :  { %s1365_s16 = smov 0   ;;  %s1367_s8 = smov 0  }
   0xe LB: > { %s1388_s17 = sadd.s32 4294967295, %s1288_s8   ;;  %s935_s18 = sadd.s32 4294967294, %s1288_s8   ;;  %s1288_s8 = sphi %s1367_s8, %s33_s8   ;;  %s1284_s16 = sphi %s1365_s16, %s1619_s16   ;;  %s1280_s7 = sphi %s1363_s7, %s1618_s7   ;;  %s1276_s15 = sphi %s1361_s15, %s1617_s15   ;;  %s1272_s14 = sphi %s1359_s14, %s1616_s14   ;;  %s1268_s13 = sphi %s1357_s13, %s1615_s13  }
   0xf   : > { %p67_p0 = scmp.ne.s32.totalorder %s1272_s14, %s1268_s13  ;;  %p1590_p1 = scmp.eq.s32.totalorder %s1388_s17, 0 }
  0x10   : > { %p281_p3 = scmp.eq.s32.totalorder %s935_s18, 1  ;;  %p936_p5 = scmp.ge.s32.totalorder %s1288_s8, 1 }
  0x11   : > { %p1397_p4 = por %p1590_p1, %p67_p0  ;;  %p288_p7 = scmp.lt.s32.totalorder %s1288_s8, 3 }
  0x12   : > { %p1402_p6 = por %p281_p3, %p67_p0  ;;  %s1290_s22 = smov [#allocation9]  }
  0x13   : > { %p1407_p8 = pnand %p936_p5, %p288_p7  ;;  %s300_s23 = sshll.u32 %s1290_s22, 4  ;;  %s301_s23 = int_to_ptr.vmem [resolvable:$true] %s300_s23 }
  0x14   : > { %s1597_s20 = scalar_select %p1402_p6, 1, 0 }
  0x15   : > { %p1002_p9 = pneg %p1407_p8  ;;  %s1291_s25 = smov [#allocation10]  }
  0x16   : > { %s313_s26 = sshll.u32 %s1291_s25, 4  ;;  %s1099_s27 = scalar_lea.vmem %s301_s23, 512  ;;  %s314_s26 = int_to_ptr.vmem [resolvable:$true] %s313_s26 }
  0x17   : > { %p1416_p11 = pnand %p1002_p9, %p1590_p1  ;;  %p1100_p13 = scmp.ne.s32.totalorder %s301_s23, %s1099_s27 }
  0x18   : > { %p1107_p5 = scmp.lt.s32.totalorder %s301_s23, %s301_s23  ;;  %p1108_p7 = scmp.lt.s32.totalorder %s1099_s27, %s1099_s27 }
  0x19   : > { %p1090_p12 = pneg %p1416_p11 }
  0x1a   : > { %p1109_p10 = por %p1108_p7, %p1107_p5 }
  0x1b   : > { %p1102_p0 = pnand %p1100_p13, %p1090_p12 }
  0x1d   : > { %p1103_p3 = pneg %p1102_p0 }
  0x1f   : > { %p1110_p9 = pnand %p1109_p10, %p1103_p3 }
  0x21   : > { %1113 = shalt.err (!%p1110_p9)
}
  0x22   : > { %s1292_s28 = smov 128   ;;  %s1293_s29 = smov 8  }
  0x23   : > { %s1600_s3 = sld [smem:[#allocation21_spill]]  ;;  %s1125_s11 = scalar_lea.vmem %s314_s26, 512 }
  0x24   : > { %p1126_p1 = scmp.ne.s32.totalorder %s314_s26, %s1125_s11  ;;  %p1133_p2 = scmp.lt.s32.totalorder %s314_s26, %s314_s26 }
  0x25   : > { %p1134_p6 = scmp.lt.s32.totalorder %s1125_s11, %s1125_s11 }
  0x26   : > { %p1128_p13 = pnand %p1126_p1, %p1090_p12 }
  0x27   : > { %p1135_p5 = por %p1134_p6, %p1133_p2 }
  0x28   : > { %p1129_p0 = pneg %p1128_p13 }
  0x29   : > { %1005 = dma.hbm_to_vmem [thread:$0]  (!%p1416_p11), %s1600_s3, 512, %s301_s23, [#allocation8], %s1292_s28, %s1292_s28, %s1293_s29  }
  0x2a   : > { %p1136_p10 = pnand %p1135_p5, %p1129_p0 }
  0x2c   : > { %1139 = shalt.err (!%p1136_p10)
}
  0x2d   : > { %s1601_s4 = sld [smem:[#allocation22_spill]]  ;;  %s45_s22 = sadd.s32 1, %s1284_s16 }
  0x2e   : > { %s54_s23 = sadd.s32 1, %s1276_s15  ;;  %p47_p1 = scmp.ge.s32.totalorder %s45_s22, 2 }
  0x2f   : > { %p61_p2 = scmp.ne.s32.totalorder %s1276_s15, %s1272_s14  ;;  %p62_p6 = scmp.eq.s32.totalorder %s1288_s8, 0 }
  0x30   : > { %p1022_p12 = scmp.lt.s32.totalorder %s1288_s8, 2  ;;  %s1621_s22 = smov (%p47_p1, %s45_s22), 0 }
  0x31   : > { %1602 = sst [smem:[#allocation18_spill]] %s1621_s22  ;;  %p63_p3 = por %p62_p6, %p61_p2 }
  0x32   : > { %p1603_p7 = scmp.eq.s32.totalorder %s1388_s17, 1  ;;  %s49_s25 = ssub.s32 %s1284_s16, %s1621_s22 }
  0x33   : > { %1008 = dma.hbm_to_vmem [thread:$0]  (!%p1416_p11), %s1601_s4, 512, %s314_s26, [#allocation11], %s1292_s28, %s1292_s28, %s1293_s29  }
  0x34   : > { %p1448_p9 = por %p1603_p7, %p61_p2  ;;  %s339_s27 = sand.u32 1, %s1276_s15  }
  0x35   : > { %p52_p13 = scmp.eq.s32.totalorder %s49_s25, 0  ;;  %s940_s26 = sshll.u32 %s339_s27, 3 }
  0x36   : > { %s941_s28 = sshll.u32 %s1284_s16, 7  ;;  %s1605_s0 = sld [smem:[#allocation19_spill]] }
  0x37   : > { %s1457_s29 = scalar_select %p52_p13, %s1276_s15, %s54_s23  }
  0x38   : > { %s343_s12 = scalar_lea.vmem [#allocation4], %s940_s26  ;;  %p1464_p11 = pnand %p1022_p12, %p63_p3 }
  0x39   : > { %s351_s18 = sshll.u32 %s343_s12, 4  ;;  %s1607_s1 = sld [smem:[#allocation20_spill]]  ;;  %s352_s18 = int_to_ptr.vmem [resolvable:$true] %s351_s18 }
  0x3a   : > { %s340_s23 = scalar_lea.sflag [#allocation5], %s339_s27  ;;  %p1142_p0 = pneg %p1464_p11 }
  0x3b   : > { %s1153_s30 = scalar_lea.vmem %s352_s18, 128  ;;  %s1294_s10 = smov [#allocation4]  }
  0x3c   : > { %s349_s11 = scalar_lea.hbm %s1605_s0, %s941_s28  ;;  %p1154_p5 = scmp.ne.s32.totalorder %s352_s18, %s1153_s30 }
  0x3d   : > { %s1158_s12 = sshll.u32 %s1294_s10, 4  ;;  %s1159_s12 = int_to_ptr.vmem [resolvable:$false] %s1158_s12 }
  0x3e   : > { %p1156_p10 = pnand %p1154_p5, %p1142_p0  ;;  %s1160_s0 = scalar_lea.vmem %s1159_s12, 256 }
  0x3f   : > { %s1471_s22 = scalar_lea.hbm %s1607_s1, %s941_s28  ;;  %p1161_p2 = scmp.lt.s32.totalorder %s352_s18, %s1159_s12 }
  0x40   : > { %p1157_p1 = pneg %p1156_p10  ;;  %p1162_p6 = scmp.lt.s32.totalorder %s1160_s0, %s1153_s30 }
  0x42   : > { %p1163_p12 = por %p1162_p6, %p1161_p2 }
  0x44   : > { %p1164_p3 = pnand %p1163_p12, %p1157_p1 }
  0x46   : > { %1167 = shalt.err (!%p1164_p3)
}
  0x47   : > { %1012 = dma.hbm_to_vmem [thread:$0]  (!%p1464_p11), %s349_s11, 128, %s352_s18, %s340_s23  }
  0x48   : > { %s358_s4 = sand.u32 1, %s1288_s8   ;;  %s362_s27 = scalar_lea.vmem [#allocation7], %s940_s26 }
  0x49   : > { %s370_s28 = sshll.u32 %s362_s27, 4  ;;  %s359_s25 = scalar_lea.sflag [#allocation8], %s358_s4  ;;  %s371_s28 = int_to_ptr.vmem [resolvable:$true] %s370_s28 }
  0x4a   : > { %s1181_s1 = scalar_lea.vmem %s371_s28, 128  ;;  %s1295_s0 = smov [#allocation7]  }
  0x4b   : > { %p1182_p7 = scmp.ne.s32.totalorder %s371_s28, %s1181_s1  ;;  %s1186_s30 = sshll.u32 %s1295_s0, 4  ;;  %s1187_s30 = int_to_ptr.vmem [resolvable:$false] %s1186_s30 }
  0x4c   : > { %s1188_s10 = scalar_lea.vmem %s1187_s30, 256  ;;  %p1189_p10 = scmp.lt.s32.totalorder %s371_s28, %s1187_s30 }
  0x4d   : > { %p1184_p13 = pnand %p1182_p7, %p1142_p0  ;;  %p1190_p1 = scmp.lt.s32.totalorder %s1188_s10, %s1181_s1 }
  0x4f   : > { %p1185_p5 = pneg %p1184_p13  ;;  %p1191_p2 = por %p1190_p1, %p1189_p10 }
  0x51   : > { %p1192_p6 = pnand %p1191_p2, %p1185_p5 }
  0x53   : > { %1195 = shalt.err (!%p1192_p6)
}
  0x54   : > { %1015 = dma.hbm_to_vmem [thread:$0]  (!%p1464_p11), %s1471_s22, 128, %s371_s28, %s359_s25  }
  0x55   : > { %388 = sbr.rel (%p1407_p8) target bundleno = 647 (0x287), region = 56  ;;  %s1490_s26 = sand.u32 (!%p1407_p8), 1, %s1272_s14  }
  0x56   : > { %s945_s11 = sshll.u32 (!%p1407_p8), %s1490_s26, 3  ;;  %s391_s18 = scalar_lea.sflag (!%p1407_p8), [#allocation5], %s1490_s26 }
  0x57   : > { %s1494_s23 = scalar_lea.vmem (!%p1407_p8), [#allocation4], %s945_s11 }
  0x5a   : > { %1247 = dma.done.wait (%p1397_p4), %s391_s18, 128  }
  0x5b   : > { %1249 = vsyncadd (%p1397_p4), %s391_s18, 4294967168  ;;  %s399_s1 = sand.u32 1, %s1388_s17   ;;  %s1501_s21 = scalar_lea.vmem [#allocation7], %s945_s11 }
  0x5c   : > { %s400_s3 = scalar_lea.sflag [#allocation8], %s399_s1 }
  0x5d   : > { %1251 = dma.done.wait (%p1397_p4), %s400_s3, 128  }
  0x5e   : > { %1253 = vsyncadd (%p1397_p4), %s400_s3, 4294967168  ;;  %p1608_p8 = scmp.eq.s32.totalorder %s1388_s17, 0 }
  0x60   : > { %1255 = dma.done.wait (%p1608_p8), [#allocation8], 512   ;;  %p1609_p11 = pmov %p1608_p8 }
  0x61   : > { %p1610_p0 = pmov %p1608_p8 }
  0x62   : > { %1257 = vsyncadd (%p1609_p11), [#allocation8], 4294966784 }
  0x63   : > { %1259 = dma.done.wait (%p1610_p0), [#allocation11], 512   ;;  %p1611_p12 = pmov %p1610_p0 }
  0x64   : > { %v1296_v2 = vmov 0.0   ;;  %vm1297_vm0 = vmmov 0   ;;  %v471_v3 = vld [vmem:[#allocation10 + $0x18] sm:$0xff]  ;;  %v470_v5 = vld [vmem:[#allocation10 + $0x10] sm:$0xff]  ;;  %v469_v7 = vld [vmem:[#allocation10 + $0x8] sm:$0xff]  ;;  %vm472_vm1 = vcmask 261120   ;;  %v660_v30 = vlaneseq }
  0x65   : > { %1261 = vsyncadd (%p1611_p12), [#allocation11], 4294966784  ;;  %966 = vmatprep.subr.mxu0 %v1296_v2  ;;  %977 = vmatprep.subr.mxu1 %v1296_v2  ;;  %v467_v4 = vld [vmem:[#allocation9 + $0x18] sm:$0xff]  ;;  %v466_v6 = vld [vmem:[#allocation9 + $0x10] sm:$0xff]  ;;  %v1298_v13 = vmov 0   ;;  %p456_p4 = scmp.lt.s32.totalorder %s1280_s7, 1 }
  0x66   : > { %974 = vmatprep.mubr.msk.f32.mxu0 %vm1297_vm0, %v1296_v2  ;;  %985 = vmatprep.mubr.msk.f32.mxu1 %vm1297_vm0, %v1296_v2  ;;  %v465_v8 = vld [vmem:[#allocation9 + $0x8] sm:$0xff]  ;;  %v468_v9 = vld [vmem:[#allocation10] sm:$0xff]  ;;  %v463_v11 = vld [vmem:[%s1501_s21] sm:$0xff]  ;;  %v661_v31 = vshrl.u32 %v660_v30, 7  ;;  %v766_v32 = vand.u32 127, %v660_v30  ;;  %s953_s0 = sshll.u32 %s1280_s7, 4 }
  0x67   : > { %967 = vmatpush3.msra.mxu0 %v471_v3  ;;  %978 = vmatpush3.msra.mxu1 %v467_v4  ;;  %v464_v10 = vld [vmem:[#allocation9] sm:$0xff]  ;;  %v951_v16 = vld [vmem:[%s1585_s5] ss:$0 sm:$0xff]  ;;  %v667_v29 = vld [vmem:[#allocation3] sm:$0x1]  ;;  %s457_s4 = scalar_select %p456_p4, %s1280_s7, 1 }
  0x68   : > { %968 = vmatprep.subr.mxu0 %v1296_v2  ;;  %979 = vmatprep.subr.mxu1 %v1296_v2  ;;  %v462_v12 = vld [vmem:[%s1494_s23] sm:$0xff]  ;;  %v952_v21 = vld [vmem:[%s1586_s6] ss:$0 sm:$0xff]  ;;  %v769_v33 = vsub.s32 %v766_v32, %v661_v31  ;;  %v662_v43 = vsub.s32 0, %v661_v31  ;;  %v1299_v48 = vmov 1966171168   ;;  %s1538_s23 = scalar_lea.hbm %s1588_s9, %s953_s0 }
  0x69   : > { %969 = vmatpush3.msra.mxu0 %v470_v5  ;;  %980 = vmatpush3.msra.mxu1 %v466_v6  ;;  %v654_v28 = vld [vmem:[#allocation2] sm:$0x1]  ;;  %v718_v49 = vunpack.c.l.s4 %v1299_v48  ;;  %v687_v55 = vsub.s32 1, %v661_v31  ;;  %v691_v56 = vsub.s32 2, %v661_v31  ;;  %v695_v57 = vsub.s32 3, %v661_v31  ;;  %s461_s25 = scalar_lea.vmem %s1582_s2, %s457_s4  ;;  %s455_s30 = scalar_lea.vmem [#allocation12], %s1490_s26 }
  0x6a   : > { %970 = vmatprep.subr.mxu0 %v1296_v2  ;;  %981 = vmatprep.subr.mxu1 %v1296_v2  ;;  %v699_v58 = vsub.s32 4, %v661_v31  ;;  %v703_v59 = vsub.s32 5, %v661_v31  ;;  %v707_v60 = vsub.s32 6, %v661_v31  ;;  %v711_v61 = vsub.s32 7, %v661_v31  ;;  %s803_s10 = sshll.u32 %s455_s30, 4  ;;  %s790_s1 = scalar_lea.sflag [#allocation6], %s1490_s26  ;;  %s804_s10 = int_to_ptr.vmem [resolvable:$true] %s803_s10 }
  0x6b   : > { %971 = vmatpush3.msra.mxu0 %v469_v7  ;;  %982 = vmatpush3.msra.mxu1 %v465_v8  ;;  %v719_v53 = vunpack.c.0.s8 %v718_v49  ;;  %vm787_vm3 = vcmask 57344   ;;  %s1196_s3 = scalar_lea.vmem %s804_s10, 16  ;;  %s1300_s7 = smov [#allocation12]  }
  0x6c   : > { %972 = vmatprep.subr.mxu0 %v1296_v2  ;;  %983 = vmatprep.subr.mxu1 %v1296_v2  ;;  %p1197_p3 = scmp.ne.s32.totalorder %s804_s10, %s1196_s3  ;;  %s1200_s21 = sshll.u32 %s1300_s7, 4  ;;  %s1201_s21 = int_to_ptr.vmem [resolvable:$false] %s1200_s21 }
  0x6d   : > { %973 = vmatpush3.msra.mxu0 %v468_v9  ;;  %984 = vmatpush3.msra.mxu1 %v464_v10  ;;  %v722_v63 = vsub.s32 %v719_v53, %v661_v31  ;;  %s1202_s17 = scalar_lea.vmem %s1201_s21, 32  ;;  %p1203_p5 = scmp.lt.s32.totalorder %s804_s10, %s1201_s21 }
  0x6e   : > { %975 = vmatmul.mubr.msk.f32.vlgmr.msra.gmra.mxu0 %vm472_vm1, %v463_v11  ;;  %986 = vmatmul.mubr.msk.f32.vlgmr.msra.gmra.mxu1 %vm472_vm1, %v462_v12  ;;  %p1198_p7 = pnand %p1197_p3, %p1448_p9  ;;  %p1204_p10 = scmp.lt.s32.totalorder %s1202_s17, %s1196_s3 }
  0x6f   : > { %1082 = vset.pattern.permute.xlu1 %v1298_v13  ;;  %1083 = vset.pattern.permute.xlu0 %v1298_v13 }
  0x70   : > { %p1199_p13 = pneg %p1198_p7  ;;  %p1205_p1 = por %p1204_p10, %p1203_p5 }
  0x72   : > { %p1206_p2 = pnand %p1205_p1, %p1199_p13 }
 0x12e   : > { %v542_v14 = vpop.f32.mrf.mxu0  ;;  %v615_v15 = vpop.f32.mrf.mxu1 }
 0x12f   : > { %v616_v17 = vadd.f32 %v615_v15, %v542_v14 }
 0x130   : > { %v976_v18 = vpop.f32.mrf.mxu0  ;;  %v987_v19 = vpop.f32.mrf.mxu1 }
 0x131   : > { %v626_v20 = vadd.f32 %v951_v16, %v616_v17 }
 0x133   : > { %1084 = vtanh.f32 %v626_v20 }
 0x140   : > { %v1085_v22 = vpop.eup %1084 }
 0x141   : > { %v628_v23 = vsel %vm472_vm1, %v1085_v22, 0.0  ;;  %v645_v24 = vmul.f32 %v1085_v22, %v952_v21  ;;  %v633_v25 = vmul.f32 %v1085_v22, %v1085_v22  ;;  %v678_v22 = vld [vmem:[%s461_s25] sm:$0x1] }
 0x142   : > { %629 = vadd.xlane.f32.xlu0 %v628_v23  ;;  %vm679_vm2 = vcmp.ne.f32.partialorder %v678_v22, 0.0 }
 0x143   : > { %v646_v26 = vsel %vm472_vm1, %v645_v24, 0.0  ;;  %v634_v27 = vsel %vm472_vm1, %v633_v25, 0.0 }
 0x144   : > { %647 = vadd.xlane.f32.xlu1 %v646_v26 }
 0x146   : > { %635 = vadd.xlane.f32.xlu0 %v634_v27 }
 0x155   : > { %657 = vperm.xlu1 %1082, %v654_v28  }
 0x15c   : > { %670 = vperm.xlu0 %1083, %v667_v29  }
 0x1cb   : > { %v630_v34 = vpop.xlane.xlu0 %629 }
 0x1cc   : > { %v632_v35 = vmul.f32 0.03125, %v630_v34 }
 0x1cd   : > { %v648_v40 = vpop.xlane.xlu1 %647 }
 0x1ce   : > { %v649_v37 = vmul.f32 %v632_v35, %v632_v35 }
 0x1cf   : > { %v636_v36 = vpop.xlane.xlu0 %635 }
 0x1d0   : > { %v637_v38 = vmul.f32 0.03125, %v636_v36 }
 0x1d1   : > { %v658_v44 = vpop.permute.xlu1 %657 }
 0x1d2   : > { %v650_v39 = vsub.f32 %v637_v38, %v649_v37  ;;  %v663_v45 = vrot.slane %v658_v44, %v662_v43 }
 0x1d4   : > { %v651_v41 = vmax.f32 %v650_v39, 0.0  ;;  %v664_v46 = vmul.f32 %v663_v45, %v632_v35 }
 0x1d6   : > { %v652_v42 = vadd.f32 1e-12, %v651_v41  ;;  %v665_v50 = vsub.f32 %v648_v40, %v664_v46 }
 0x1d7   : > { %v671_v47 = vpop.permute.xlu0 %670 }
 0x1d8   : > { %1086 = vrsqrt.f32 %v652_v42  ;;  %v676_v51 = vrot.slane %v671_v47, %v662_v43 }
 0x1e5   : > { %v1087_v52 = vpop.eup %1086 }
 0x1e6   : > { %v666_v54 = vmul.f32 %v1087_v52, %v665_v50 }
 0x1e8   : > { %v677_v62 = vadd.f32 %v676_v51, %v666_v54 }
 0x1ea   : > { %v684_v0 = vrot.slane %v677_v62, %v662_v43  ;;  %v688_v1 = vrot.slane %v677_v62, %v687_v55  ;;  %v692_v2 = vrot.slane %v677_v62, %v691_v56  ;;  %v696_v3 = vrot.slane %v677_v62, %v695_v57 }
 0x1eb   : > { %v700_v4 = vrot.slane %v677_v62, %v699_v58  ;;  %v704_v5 = vrot.slane %v677_v62, %v703_v59  ;;  %v708_v6 = vrot.slane %v677_v62, %v707_v60  ;;  %v712_v7 = vrot.slane %v677_v62, %v711_v61 }
 0x1ec   : > { %v713_v8 = vcombine.low %v684_v0, %v688_v1  ;;  %v714_v9 = vcombine.low %v692_v2, %v696_v3 }
 0x1ed   : > { %v715_v10 = vcombine.low %v700_v4, %v704_v5  ;;  %v716_v11 = vcombine.low %v708_v6, %v712_v7 }
 0x1ee   : > { %v723_v12 = vrot.slane %v713_v8, %v722_v63  ;;  %v730_v13 = vrot.slane %v714_v9, %v722_v63 }
 0x1ef   : > { %v737_v14 = vrot.slane %v715_v10, %v722_v63  ;;  %v744_v15 = vrot.slane %v716_v11, %v722_v63 }
 0x1f0   : > { %v745_v16 = vcombine.low %v723_v12, %v730_v13 }
 0x1f1   : > { %v746_v17 = vcombine.low %v737_v14, %v744_v15 }
 0x1f2   : > { %v753_v18 = vrot.slane %v745_v16, %v722_v63 }
 0x1f3   : > { %v760_v19 = vrot.slane %v746_v17, %v722_v63 }
 0x1f5   : > { %v761_v20 = vcombine.low %v753_v18, %v760_v19 }
 0x1f7   : > { %763 = vperm.xlu1 %1082, %v761_v20  }
 0x272   : > { %v764_v21 = vpop.permute.xlu1 %763 }
 0x273   : > { %v770_v23 = vrot.slane %v764_v21, %v769_v33 }
 0x275   : > { %v777_v24 = vrot.slane %v770_v23, %v722_v63 }
 0x277   : > { %v784_v25 = vrot.slane %v777_v24, %v722_v63 }
 0x279   : > { %v786_v26 = vsel %vm679_vm2, -1e+30, %v784_v25 }
 0x27a   : > { %788 = vst.msk [vmem:[%s455_s30] sm:$0x1] %vm787_vm3, %v786_v26 }
 0x27b   : > { %1209 = shalt.err (!%p1206_p2)
}
 0x27c   : > { %s1210_s19 = scalar_lea.hbm %s1538_s23, 16  ;;  %s1214_s12 = scalar_lea.hbm %s1588_s9, 32 }
 0x27d   : > { %p1211_p6 = scmp.ne.s32.totalorder %s1538_s23, %s1210_s19  ;;  %p1215_p0 = scmp.lt.s32.totalorder %s1538_s23, %s1588_s9 }
 0x27e   : > { %p1216_p12 = scmp.lt.s32.totalorder %s1214_s12, %s1210_s19 }
 0x27f   : > { %p1212_p8 = pnand %p1211_p6, %p1448_p9 }
 0x280   : > { %p1217_p4 = por %p1216_p12, %p1215_p0 }
 0x281   : > { %p1213_p11 = pneg %p1212_p8 }
 0x283   : > { %p1218_p3 = pnand %p1217_p4, %p1213_p11 }
 0x285   : > { %1221 = shalt.err (!%p1218_p3)
}
 0x286   : > { %1000 = dma.vmem_to_hbm [thread:$0]  (%p1448_p9), %s804_s10, 16, %s1538_s23, %s790_s1  }
 0x287 PF: > { %s815_s28 = sand.u32 1, %s1268_s13   ;;  %p1612_p7 = scmp.ne.s32.totalorder %s1597_s20, 0 }
 0x288   : > { %p1613_p13 = scmp.ge.s32.totalorder %s1288_s8, 2  ;;  %s816_s25 = scalar_lea.sflag [#allocation6], %s815_s28 }
 0x28a   : > { %p1017_p5 = pnand %p1613_p13, %p1612_p7 }
 0x28c   : > { %p1018_p10 = pneg %p1017_p5 }
 0x28e   : > { %1263 = dma.done.wait (%p1018_p10), %s816_s25, 16  }
 0x28f   : > { %1265 = vsyncadd (%p1018_p10), %s816_s25, 4294967280  ;;  %s33_s8 = sadd.s32 1, %s1288_s8   ;;  %s1614_s24 = sld [smem:[#allocation18_spill]] }
 0x290   : > { %p30_p1 = scmp.ge.s32.totalorder %s33_s8, 4   ;;  %s1615_s13 = smov %s1272_s14 }
 0x291   : > { %s1616_s14 = smov %s1276_s15  ;;  %s1617_s15 = smov %s1457_s29 }
 0x292   : > { %s1618_s7 = smov %s1284_s16  ;;  %32 = sbr.rel (!%p30_p1) target bundleno = 14 (0xe), region = 125 }
 0x295   : > { %s1619_s16 = smov %s1614_s24 }
 0x297   :  { %820 = vsyncpa [#allocation5], 1 }
 0x298   :  { %822 = vsyncpa [#allocation5 + $0x1], 1 }
 0x299   :  { %823 = vsyncpa [#allocation8], 1 }
 0x29a   :  { %825 = vsyncpa [#allocation8 + $0x1], 1 }
 0x29b   :  { %826 = vsyncpa [#allocation11], 1 }
 0x29c   :  { %827 = vsyncpa [#allocation6], 1 }
 0x29d   :  { %829 = vsyncpa [#allocation6 + $0x1], 1 }

</bundles_post_ra>
